<compile_context>
chip_gen: v6e
topology: v6e:2x2x1
jax: 0.10.0
libtpu: 0.0.40
codegen_flags: <defaults>
</compile_context>

<pallas_src>
import jax
import jax.numpy as jnp
from jax.experimental import pallas as pl
from jax.experimental.pallas import tpu as pltpu


def _round_up(v, m):
    return (v + m - 1) // m * m


# --------------------------------------------------------------------------
# Kernels
# --------------------------------------------------------------------------
def _residual_linear_kernel_full_k(x_ref, w_ref, b_ref, r_ref, o_ref):
    """out = x @ W + b + x for one (i, j) tile; full reduction dim resident.

    x_ref : (tm, Hp) bf16 LHS tile          (block index (i, 0))
    w_ref : (Hp, tn) bf16 weight tile       (block index (0, j))
    b_ref : (1,  tn) bias tile              (block index (0, j))
    r_ref : (tm, tn) residual tile of x     (block index (i, j))
    o_ref : (tm, tn) output tile            (block index (i, j))
    """
    y = jnp.dot(x_ref[...], w_ref[...], preferred_element_type=jnp.float32)
    y = y + b_ref[...].astype(jnp.float32) + r_ref[...].astype(jnp.float32)
    o_ref[...] = y.astype(o_ref.dtype)


def _residual_linear_kernel_split_k(x_ref, w_ref, b_ref, r_ref, o_ref,
                                    acc_ref):
    """One (i, j, k) grid step of out = x @ W + b + x with a k reduction axis.

    x_ref : (tm, tk) bf16 LHS tile          (block index (i, k))
    w_ref : (tk, tn) bf16 weight tile       (block index (k, j))
    b_ref : (1,  tn) bias tile              (block index (0, j))
    r_ref : (tm, tn) residual tile of x     (block index (i, j))
    o_ref : (tm, tn) output tile            (block index (i, j))
    acc_ref: (tm, tn) f32 VMEM accumulator, resident across the k axis.
    """
    k = pl.program_id(2)
    partial = jnp.dot(x_ref[...], w_ref[...],
                      preferred_element_type=jnp.float32)

    @pl.when(k == 0)
    def _init():
        acc_ref[...] = partial          # no zero-fill + add on the first step

    @pl.when(k > 0)
    def _accumulate():
        acc_ref[...] += partial

    @pl.when(k == pl.num_programs(2) - 1)
    def _finalize():
        y = acc_ref[...] + b_ref[...].astype(jnp.float32) \
            + r_ref[...].astype(jnp.float32)
        o_ref[...] = y.astype(o_ref.dtype)


# --------------------------------------------------------------------------
# Tile selection heuristics
# --------------------------------------------------------------------------
def _pick_tm(T):
    """Largest token tile with <= ~12.5% padding overhead beyond minimal."""
    tp_min = _round_up(T, 16)          # 16 sublanes: safe for bf16 packing
    limit = max(tp_min, int(1.125 * tp_min))
    for cand in (512, 256, 128, 64, 32, 16):
        if _round_up(T, cand) <= limit:
            return cand
    return 16


def _pick_tn(Hp, want_split):
    cands = [c for c in (512, 256, 128) if Hp % c == 0]
    tn = cands[0]
    if want_split:
        # keep >= 2 feature blocks so v7x's two TensorCores both get work
        for c in cands:
            if Hp // c >= 2:
                tn = c
                break
    return tn


def _pick_tk(Hp):
    if Hp <= 2048:
        return Hp                       # full reduction dim resident
    for c in (2048, 1024, 512, 256, 128):
        if Hp % c == 0:
            return c
    return 128


# --------------------------------------------------------------------------
# Wrapper
# --------------------------------------------------------------------------
def residual_linear(x, w, b, *, use_bf16_matmul=True, allow_fallback=True):
    """out = x @ w + b + x, fused in one Pallas kernel.

    x: (T, H), w: (H, H), b: (H,).
    """
    T, H = x.shape
    assert w.shape == (H, H), "Residual requires a square Linear (H_in == H_out)."
    assert b.shape == (H,)

    compute_dtype = jnp.bfloat16 if use_bf16_matmul else x.dtype

    # Small-H fallback: padding H < 128 up to 128 inflates MXU work and the
    # fixed launch/step overhead dominates; plain XLA fusion is faster.
    if allow_fallback and H < 128:
        y = jnp.dot(x.astype(compute_dtype), w.astype(compute_dtype),
                    preferred_element_type=jnp.float32)
        return (y + b.astype(jnp.float32) + x.astype(jnp.float32)).astype(x.dtype)

    # ---- tile selection ---------------------------------------------------
    Hp = _round_up(H, 128)
    tm = _pick_tm(T)
    Tp = _round_up(T, tm)
    tn = _pick_tn(Hp, want_split=(Tp // tm == 1))
    tk = _pick_tk(Hp)

    # ---- pad (only if needed) and pre-cast MXU operands to bf16 in HBM -----
    need_pad = (Tp != T) or (Hp != H)
    if need_pad:
        x_lhs = jnp.pad(x, ((0, Tp - T), (0, Hp - H))).astype(compute_dtype)
        x_res = jnp.pad(x, ((0, Tp - T), (0, Hp - H)))
        wp = jnp.pad(w, ((0, Hp - H), (0, Hp - H))).astype(compute_dtype)
        bp = jnp.pad(b, (0, Hp - H)).reshape(1, Hp)
    else:
        x_lhs = x.astype(compute_dtype)
        x_res = x
        wp = w.astype(compute_dtype)
        bp = b.reshape(1, Hp)

    # ---- grid / specs -------------------------------------------------------
    if tk == Hp:
        # Full reduction dim resident: no k axis, no accumulator scratch.
        grid = (Tp // tm, Hp // tn)
        in_specs = [
            pl.BlockSpec((tm, Hp), lambda i, j: (i, 0)),   # x as bf16 LHS
            pl.BlockSpec((Hp, tn), lambda i, j: (0, j)),   # W (bf16)
            pl.BlockSpec((1, tn), lambda i, j: (0, j)),    # bias per j
            pl.BlockSpec((tm, tn), lambda i, j: (i, j)),   # x residual (orig dtype)
        ]
        out_specs = pl.BlockSpec((tm, tn), lambda i, j: (i, j))
        scratch_shapes = []
        kernel = _residual_linear_kernel_full_k
        dims = ("parallel", "parallel")
    else:
        grid = (Tp // tm, Hp // tn, Hp // tk)              # reduction axis last
        in_specs = [
            pl.BlockSpec((tm, tk), lambda i, j, k: (i, k)),
            pl.BlockSpec((tk, tn), lambda i, j, k: (k, j)),
            pl.BlockSpec((1, tn), lambda i, j, k: (0, j)),
            pl.BlockSpec((tm, tn), lambda i, j, k: (i, j)),
        ]
        out_specs = pl.BlockSpec((tm, tn), lambda i, j, k: (i, j))
        scratch_shapes = [pltpu.VMEM((tm, tn), jnp.float32)]
        kernel = _residual_linear_kernel_split_k
        dims = ("parallel", "parallel", "arbitrary")

    lhs_bytes = jnp.dtype(compute_dtype).itemsize
    io_bytes = x.dtype.itemsize
    cost = pl.CostEstimate(
        flops=2 * Tp * Hp * Hp,
        transcendentals=0,
        bytes_accessed=int(
            Tp * Hp * lhs_bytes * (Hp // tn)      # x LHS re-read per j tile
            + Hp * Hp * lhs_bytes * (Tp // tm)    # W re-read per i tile
            + Tp * Hp * io_bytes                  # residual
            + Tp * Hp * io_bytes                  # output
            + Hp * b.dtype.itemsize               # bias
        ),
    )

    out = pl.pallas_call(
        kernel,
        out_shape=jax.ShapeDtypeStruct((Tp, Hp), x.dtype),
        grid_spec=pltpu.PrefetchScalarGridSpec(
            num_scalar_prefetch=0,
            grid=grid,
            in_specs=in_specs,
            out_specs=out_specs,
            scratch_shapes=scratch_shapes,
        ),
        compiler_params=pltpu.CompilerParams(
            dimension_semantics=dims,
            # Max tile config (tm=tn=512, tk=2048 bf16) is ~13 MiB double
            # buffered; 48 MiB leaves headroom on v7x's 64 MiB VMEM while
            # letting v5e/v6e use large resident tiles.
            vmem_limit_bytes=48 * 1024 * 1024,
        ),
        cost_estimate=cost,
    )(x_lhs, wp, bp, x_res)

    if need_pad:
        out = out[:T, :H]
    return out


def residual_forward(x, w, b):
    """x: (B, S, H) -> Residual(Linear)(x), same shape."""
    B, S, H = x.shape
    out = residual_linear(x.reshape(B * S, H), w, b)
    return out.reshape(B, S, H)


if __name__ == "__main__":
    # Small Transformer-ish shape; H=128 so the Pallas path (not the small-H
    # fallback) is exercised.
    B, S, H = 2, 8, 128
    key = jax.random.PRNGKey(0)
    kx, kw, kb = jax.random.split(key, 3)

    x = jax.random.normal(kx, (B, S, H), dtype=jnp.float32)
    # Deterministic parameter init (stand-in for the wrapped fn's weights).
    w = jax.random.normal(kw, (H, H), dtype=jnp.float32) * (1.0 / jnp.sqrt(H))
    b = jax.random.normal(kb, (H,), dtype=jnp.float32) * 0.01

    out = residual_forward(x, w, b)
    jax.block_until_ready(out)

    # Reference: fn(x) + x with the same bf16-operand / f32-accumulate matmul.
    x2d = x.reshape(B * S, H)
    ref = (
        jnp.dot(
            x2d.astype(jnp.bfloat16),
            w.astype(jnp.bfloat16),
            preferred_element_type=jnp.float32,
        )
        + b
        + x2d
    ).reshape(B, S, H)
    assert jnp.allclose(out, ref, atol=1e-3, rtol=1e-3), \
        float(jnp.max(jnp.abs(out - ref)))

    print("KERNEL_OK")
</pallas_src>

<mosaic_0001>
module attributes {stable_mosaic.version = 11 : i64} {
  func.func @_residual_linear_kernel_full_k(%arg0: i32, %arg1: i32, %arg2: memref<16x128xbf16, #tpu.memory_space<vmem>>, %arg3: memref<128x128xbf16, #tpu.memory_space<vmem>>, %arg4: memref<1x128xf32, #tpu.memory_space<vmem>>, %arg5: memref<16x128xf32, #tpu.memory_space<vmem>>, %arg6: memref<16x128xf32, #tpu.memory_space<vmem>>) attributes {dimension_semantics = [#tpu.dimension_semantics<parallel>, #tpu.dimension_semantics<parallel>], iteration_bounds = array<i64: 1, 1>, scalar_prefetch = 0 : i64, scratch_operands = 0 : i64, tpu.core_type = #tpu.core_type<tc>, window_params = [{transform_indices = @transform_0, window_bounds = array<i64: 16, 128>}, {transform_indices = @transform_1, window_bounds = array<i64: 128, 128>}, {transform_indices = @transform_2, window_bounds = array<i64: 1, 128>}, {transform_indices = @transform_3, window_bounds = array<i64: 16, 128>}, {transform_indices = @transform_4, window_bounds = array<i64: 16, 128>}]} {
    %c0 = arith.constant 0 : index
    %c0_0 = arith.constant 0 : index
    %0 = vector.load %arg2[%c0, %c0_0] : memref<16x128xbf16, #tpu.memory_space<vmem>>, vector<16x128xbf16>
    %c0_1 = arith.constant 0 : index
    %c0_2 = arith.constant 0 : index
    %1 = vector.load %arg3[%c0_1, %c0_2] : memref<128x128xbf16, #tpu.memory_space<vmem>>, vector<128x128xbf16>
    %cst = arith.constant dense<0.000000e+00> : vector<16x128xf32>
    %2 = tpu.matmul %0, %1, %cst {dimension_numbers = #tpu.dot_dimension_numbers<[1], [0], [0], [1], [0, 0, 1, 1], [], []>} : vector<16x128xbf16>, vector<128x128xbf16>, vector<16x128xf32> -> vector<16x128xf32>
    %c0_3 = arith.constant 0 : index
    %c0_4 = arith.constant 0 : index
    %3 = vector.load %arg4[%c0_3, %c0_4] : memref<1x128xf32, #tpu.memory_space<vmem>>, vector<1x128xf32>
    %4 = vector.broadcast %3 : vector<1x128xf32> to vector<16x128xf32>
    %5 = arith.addf %2, %4 : vector<16x128xf32>
    %c0_5 = arith.constant 0 : index
    %c0_6 = arith.constant 0 : index
    %6 = vector.load %arg5[%c0_5, %c0_6] : memref<16x128xf32, #tpu.memory_space<vmem>>, vector<16x128xf32>
    %7 = arith.addf %5, %6 : vector<16x128xf32>
    %c0_7 = arith.constant 0 : index
    %c0_8 = arith.constant 0 : index
    %8 = vector.load %arg6[%c0_7, %c0_8] : memref<16x128xf32, #tpu.memory_space<vmem>>, vector<16x128xf32>
    tpu.vector_store %arg6[%c0_7, %c0_8], %7 {strides = array<i32>} : memref<16x128xf32, #tpu.memory_space<vmem>>, vector<16x128xf32>,
    return
  }
  func.func @transform_0(%arg0: i32, %arg1: i32) -> (i32, i32) {
    %c0_i32 = arith.constant 0 : i32
    %c0_i32_0 = arith.constant 0 : i32
    return %arg0, %c0_i32 : i32, i32
  }
  func.func @transform_1(%arg0: i32, %arg1: i32) -> (i32, i32) {
    %c0_i32 = arith.constant 0 : i32
    %c0_i32_0 = arith.constant 0 : i32
    return %c0_i32, %arg1 : i32, i32
  }
  func.func @transform_2(%arg0: i32, %arg1: i32) -> (i32, i32) {
    %c0_i32 = arith.constant 0 : i32
    %c0_i32_0 = arith.constant 0 : i32
    return %c0_i32, %arg1 : i32, i32
  }
  func.func @transform_3(%arg0: i32, %arg1: i32) -> (i32, i32) {
    %c0_i32 = arith.constant 0 : i32
    return %arg0, %arg1 : i32, i32
  }
  func.func @transform_4(%arg0: i32, %arg1: i32) -> (i32, i32) {
    %c0_i32 = arith.constant 0 : i32
    return %arg0, %arg1 : i32, i32
  }
}

</mosaic_0001>

<bundles_post_ra>
// kernel: tpu_custom_call.1
= control target key start
LH: loop header
LB: loop body
LE: loop exit
PB: predicated region body
PF: predicated region fallthrough
CT: control target
= control target key end

     0   :  { %9 = vsyncpa [#allocation3], 0  ;;  %s404_s0 = inlined_call_operand.hbm [shape: bf16[16,128], index: 0, kind: input, shape index: {}]   ;;  %s405_s1 = inlined_call_operand.hbm [shape: bf16[128,128], index: 1, kind: input, shape index: {}]   ;;  %s406_s2 = inlined_call_operand.vmem [shape: f32[1,128], index: 2, kind: input, shape index: {}]   ;;  %s407_s3 = inlined_call_operand.hbm [shape: f32[16,128], index: 3, kind: input, shape index: {}]   ;;  %s408_s4 = inlined_call_operand.hbm [shape: f32[16,128], index: 4, kind: output, shape index: {}]  }
   0x1   :  { %10 = vsyncpa [#allocation6], 0 }
   0x2   :  { %11 = vsyncpa [#allocation4], 0  ;;  %s348_s15 = smov [#allocation5]   ;;  %s349_s17 = smov [#allocation2]  }
   0x3   :  { %s29_s16 = sshll.u32 %s348_s15, 4  ;;  %s17_s18 = sshll.u32 %s349_s17, 4  ;;  %s30_s16 = int_to_ptr.vmem [resolvable:$true] %s29_s16  ;;  %s18_s18 = int_to_ptr.vmem [resolvable:$true] %s17_s18 }
   0x4   :  { %s270_s19 = scalar_lea.vmem %s30_s16, 1024  ;;  %p275_p1 = scmp.lt.s32.totalorder %s30_s16, %s30_s16 }
   0x5   :  { %p271_p0 = scmp.ne.s32.totalorder %s30_s16, %s270_s19  ;;  %p276_p2 = scmp.lt.s32.totalorder %s270_s19, %s270_s19 }
   0x7   :  { %p277_p3 = por %p276_p2, %p275_p1 }
   0x9   :  { %p278_p4 = pnand %p277_p3, %p271_p0 }
   0xb   :  { %281 = shalt.err (!%p278_p4)
}
   0xc   :  { %s350_s20 = smov 64   ;;  %s351_s21 = smov 4  }
   0xd   :  { %35 = dma.hbm_to_vmem [thread:$0]  %s405_s1, 1024, %s30_s16, [#allocation6], %s350_s20, %s350_s20, %s351_s21  }
   0xe   :  { %s290_s24 = scalar_lea.vmem %s18_s18, 128  ;;  %p295_p6 = scmp.lt.s32.totalorder %s18_s18, %s18_s18 }
   0xf   :  { %p291_p5 = scmp.ne.s32.totalorder %s18_s18, %s290_s24  ;;  %p296_p7 = scmp.lt.s32.totalorder %s290_s24, %s290_s24 }
  0x11   :  { %p297_p8 = por %p296_p7, %p295_p6 }
  0x13   :  { %p298_p9 = pnand %p297_p8, %p291_p5 }
  0x15   :  { %301 = shalt.err (!%p298_p9)
}
  0x16   :  { %23 = dma.hbm_to_vmem [thread:$0]  %s404_s0, 128, %s18_s18, [#allocation3], %s350_s20, %s350_s20, %s351_s21  }
  0x17   :  { %s352_s27 = smov [#allocation7]  }
  0x18   :  { %s43_s28 = sshll.u32 %s352_s27, 4  ;;  %s44_s28 = int_to_ptr.vmem [resolvable:$true] %s43_s28 }
  0x19   :  { %s310_s29 = scalar_lea.vmem %s44_s28, 256  ;;  %p315_p11 = scmp.lt.s32.totalorder %s44_s28, %s44_s28 }
  0x1a   :  { %p311_p10 = scmp.ne.s32.totalorder %s44_s28, %s310_s29  ;;  %p316_p12 = scmp.lt.s32.totalorder %s310_s29, %s310_s29 }
  0x1c   :  { %p317_p13 = por %p316_p12, %p315_p11 }
  0x1e   :  { %p318_p0 = pnand %p317_p13, %p311_p10 }
  0x20   :  { %321 = shalt.err (!%p318_p0)
}
  0x21   :  { %s353_s1 = smov 128   ;;  %s354_s30 = smov 8  }
  0x22   :  { %49 = dma.hbm_to_vmem [thread:$0]  %s407_s3, 256, %s44_s28, [#allocation6], %s353_s1, %s353_s1, %s354_s30  }
  0x23   :  { %342 = dma.done.wait [#allocation3], 128  }
  0x24   :  { %343 = vsyncadd [#allocation3], 4294967168 }
  0x25   :  { %344 = dma.done.wait [#allocation6], 1280  }
  0x26   :  { %345 = vsyncadd [#allocation6], 4294966016  ;;  %v355_v0 = vmov 0.0   ;;  %vm356_vm0 = vmmov 0   ;;  %v253_v1 = vld [vmem:[#allocation5 + $0x38] sm:$0xff]   ;;  %v254_v2 = vld [vmem:[#allocation5 + $0x30] sm:$0xff]  }
  0x27   :  { %223 = vmatprep.subr.bf16.mxu0 %v355_v0  ;;  %239 = vmatprep.mubr.msk.bf16.mxu0 %vm356_vm0, %v355_v0  ;;  %v255_v3 = vld [vmem:[#allocation5 + $0x28] sm:$0xff]   ;;  %v256_v4 = vld [vmem:[#allocation5 + $0x20] sm:$0xff]   ;;  %v257_v5 = vld [vmem:[#allocation5 + $0x18] sm:$0xff]   ;;  %s357_s7 = smov [#allocation8]  }
  0x28   :  { %224 = vmatpush3.bf16.msra.mxu0 %v253_v1  ;;  %v258_v6 = vld [vmem:[#allocation5 + $0x10] sm:$0xff]   ;;  %v259_v7 = vld [vmem:[#allocation5 + $0x8] sm:$0xff]   ;;  %v260_v8 = vld [vmem:[#allocation5] sm:$0xff]   ;;  %s191_s8 = sshll.u32 %s357_s7, 4  ;;  %s192_s8 = int_to_ptr.vmem [resolvable:$true] %s191_s8 }
  0x29   :  { %225 = vmatprep.subr.bf16.mxu0 %v355_v0  ;;  %v261_v9 = vld [vmem:[#allocation2] sm:$0xff]   ;;  %v180_v12 = vld [vmem:[#allocation7] sm:$0xff]  ;;  %v181_v17 = vld [vmem:[#allocation7 + $0x8] sm:$0xff]  ;;  %s322_s9 = scalar_lea.vmem %s192_s8, 256  ;;  %p327_p2 = scmp.lt.s32.totalorder %s192_s8, %s192_s8 }
  0x2a   :  { %v204_v10 = vld [vmem:[%s406_s2] ss:$0 sm:$0xff]  ;;  %p323_p1 = scmp.ne.s32.totalorder %s192_s8, %s322_s9  ;;  %p328_p3 = scmp.lt.s32.totalorder %s322_s9, %s322_s9 }
  0x2c   :  { %226 = vmatpush3.bf16.msra.mxu0 %v254_v2  ;;  %p329_p4 = por %p328_p3, %p327_p2 }
  0x2d   :  { %227 = vmatprep.subr.bf16.mxu0 %v355_v0 }
  0x2e   :  { %p330_p5 = pnand %p329_p4, %p323_p1 }
  0x30   :  { %228 = vmatpush3.bf16.msra.mxu0 %v255_v3 }
  0x31   :  { %229 = vmatprep.subr.bf16.mxu0 %v355_v0 }
  0x34   :  { %230 = vmatpush3.bf16.msra.mxu0 %v256_v4 }
  0x35   :  { %231 = vmatprep.subr.bf16.mxu0 %v355_v0 }
  0x38   :  { %232 = vmatpush3.bf16.msra.mxu0 %v257_v5 }
  0x39   :  { %233 = vmatprep.subr.bf16.mxu0 %v355_v0 }
  0x3c   :  { %234 = vmatpush3.bf16.msra.mxu0 %v258_v6 }
  0x3d   :  { %235 = vmatprep.subr.bf16.mxu0 %v355_v0 }
  0x40   :  { %236 = vmatpush3.bf16.msra.mxu0 %v259_v7 }
  0x41   :  { %237 = vmatprep.subr.bf16.mxu0 %v355_v0 }
  0x44   :  { %238 = vmatpush3.bf16.msra.mxu0 %v260_v8 }
  0x47   :  { %240 = vmatmul.mubr.bf16.vlgmr.msra.gmra.mxu0 %v261_v9 }
 0x107   :  { %v173_v11 = vpop.f32.mrf.mxu0 }
 0x108   :  { %v174_v13 = vadd.f32 %v204_v10, %v173_v11 }
 0x109   :  { %v241_v14 = vpop.f32.mrf.mxu0 }
 0x10a   :  { %v182_v15 = vadd.f32 %v180_v12, %v174_v13 }
 0x10b   :  { %v176_v16 = vpop.f32.mrf.mxu0 }
 0x10c   :  { %184 = vst [vmem:[#allocation8] sm:$0xff] %v182_v15  ;;  %v177_v18 = vadd.f32 %v204_v10, %v176_v16 }
 0x10d   :  { %v242_v19 = vpop.f32.mrf.mxu0 }
 0x10e   :  { %v183_v20 = vadd.f32 %v181_v17, %v177_v18 }
 0x110   :  { %185 = vst [vmem:[#allocation8 + $0x8] sm:$0xff] %v183_v20 }
 0x111   :  { %333 = shalt.err (!%p330_p5)
}
 0x112   :  { %197 = dma.vmem_to_hbm [thread:$0]  %s192_s8, 256, %s408_s4, [#allocation4], %s353_s1, %s353_s1, %s354_s30  }
 0x113   :  { %346 = dma.done.wait [#allocation4], 256  }
 0x114   :  { %347 = vsyncadd [#allocation4], 4294967040 }
 0x115   :  { %201 = vsyncpa [#allocation3], 1 }
 0x116   :  { %202 = vsyncpa [#allocation6], 1 }
 0x117   :  { %203 = vsyncpa [#allocation4], 1 }

</bundles_post_ra>
